<compile_context>
chip_gen: v6e
topology: v6e:2x2x1
jax: 0.10.0
libtpu: 0.0.40
codegen_flags: <defaults>
</compile_context>

<pallas_src>
import functools

import jax
import jax.numpy as jnp
from jax import lax
from jax.experimental import pallas as pl
from jax.experimental.pallas import tpu as pltpu


LN_EPS = 1e-5          # PyTorch nn.LayerNorm default eps
LEAKY_SLOPE = 0.2      # nn.LeakyReLU(0.2)


def _leaky_relu(x):
    # max(x, 0.2*x) == LeakyReLU(0.2)(x); one mul + one max on the VPU.
    return jnp.maximum(x, LEAKY_SLOPE * x)


def _mxu_matmul(x, w, use_bf16):
    # bf16 operands, f32 accumulation -> native MXU path on v5e/v6e/v7x.
    if use_bf16:
        x = x.astype(jnp.bfloat16)
        w = w.astype(jnp.bfloat16)
    return jnp.dot(x, w, preferred_element_type=jnp.float32)


def generator_kernel(z_ref, w_blk_ref, b_blk_ref, g_blk_ref, be_blk_ref,
                     w4_ref, b4_ref, out_ref, *, use_bf16_matmul):
    """Full Generator forward.

    z_ref:      (B, Zd)
    w_blk_ref:  (4, Zd, Zd)   stacked block Linear weights (x @ W layout)
    b_blk_ref:  (4, 1, Zd)    stacked block Linear biases
    g_blk_ref:  (4, 1, Zd)    stacked LayerNorm gammas
    be_blk_ref: (4, 1, Zd)    stacked LayerNorm betas
    w4_ref:     (Zd, Dout)    final Linear weight
    b4_ref:     (1, Dout)     final Linear bias
    out_ref:    (B, Dout)
    """
    x = z_ref[...]                              # f32 activations
    inv_d = 1.0 / z_ref.shape[-1]               # static 1/Zd

    # Four residual blocks: LeakyReLU(LayerNorm(Linear(x))) + x  (static unroll)
    for i in range(4):
        w = w_blk_ref[i]
        b = b_blk_ref[i]
        g = g_blk_ref[i]
        be = be_blk_ref[i]

        h = _mxu_matmul(x, w, use_bf16_matmul) + b

        # Two independent cross-lane reductions (can dual-issue on the XLUs),
        # then var = E[h^2] - mean^2, clamped for numerical safety.
        s1 = jnp.sum(h, axis=-1, keepdims=True)
        s2 = jnp.sum(h * h, axis=-1, keepdims=True)
        mean = s1 * inv_d
        var = jnp.maximum(s2 * inv_d - mean * mean, 0.0)

        h_norm = (h - mean) * lax.rsqrt(var + LN_EPS)   # rsqrt -> EUP slot
        h_aff = h_norm * g + be
        x = _leaky_relu(h_aff) + x

    # Final Linear -> LeakyReLU (lane-dense 128-wide output).
    y = _mxu_matmul(x, w4_ref[...], use_bf16_matmul) + b4_ref[...]
    out_ref[...] = _leaky_relu(y)


def generator_forward(z, w_blk, b_blk, g_blk, be_blk, w4, b4,
                      *, use_bf16_matmul=True):
    B = z.shape[0]
    d_out = w4.shape[1]
    vmem = pl.BlockSpec(memory_space=pltpu.MemorySpace.VMEM)
    kernel = functools.partial(generator_kernel,
                               use_bf16_matmul=use_bf16_matmul)
    return pl.pallas_call(
        kernel,
        out_shape=jax.ShapeDtypeStruct((B, d_out), jnp.float32),
        in_specs=[vmem] * 7,
        out_specs=vmem,
    )(z, w_blk, b_blk, g_blk, be_blk, w4, b4)


def init_params(key, z_dim, hidden_dim, layers):
    """Deterministic parameter init mimicking nn.Linear's U(-1/sqrt(fan_in), +)."""
    d_out = hidden_dim * (layers + 1)
    keys = jax.random.split(key, 4)

    bound = 1.0 / jnp.sqrt(z_dim)
    w_blk = jax.random.uniform(keys[0], (4, z_dim, z_dim), jnp.float32,
                               -bound, bound)
    b_blk = jax.random.uniform(keys[1], (4, 1, z_dim), jnp.float32,
                               -bound, bound)
    g_blk = jnp.ones((4, 1, z_dim), jnp.float32)     # LayerNorm weight
    be_blk = jnp.zeros((4, 1, z_dim), jnp.float32)   # LayerNorm bias

    w4 = jax.random.uniform(keys[2], (z_dim, d_out), jnp.float32,
                            -bound, bound)
    b4 = jax.random.uniform(keys[3], (1, d_out), jnp.float32,
                            -bound, bound)
    return w_blk, b_blk, g_blk, be_blk, w4, b4


def reference_forward(z, w_blk, b_blk, g_blk, be_blk, w4, b4):
    """Pure-JAX f32 reference (mirrors the PyTorch module)."""
    x = z
    for i in range(4):
        h = x @ w_blk[i] + b_blk[i]
        mean = jnp.mean(h, axis=-1, keepdims=True)
        var = jnp.mean((h - mean) ** 2, axis=-1, keepdims=True)
        hn = (h - mean) / jnp.sqrt(var + LN_EPS)
        hn = hn * g_blk[i] + be_blk[i]
        x = jnp.where(hn >= 0, hn, LEAKY_SLOPE * hn) + x
    y = x @ w4 + b4
    return jnp.where(y >= 0, y, LEAKY_SLOPE * y)


if __name__ == "__main__":
    # Small shapes consistent with the module's forward.
    batch = 8
    z_dim = 32
    hidden_dim = 32
    layers = 3                      # final output dim = hidden_dim*(layers+1) = 128

    key = jax.random.PRNGKey(0)
    k_z, k_p = jax.random.split(key)
    z = jax.random.normal(k_z, (batch, z_dim), jnp.float32)
    params = init_params(k_p, z_dim, hidden_dim, layers)

    ref = reference_forward(z, *params)

    # 1) Strict-precision validation path (f32 matmuls): proves semantics.
    out_f32 = jax.block_until_ready(
        generator_forward(z, *params, use_bf16_matmul=False))
    assert out_f32.shape == (batch, hidden_dim * (layers + 1))
    assert jnp.allclose(out_f32, ref, atol=1e-4, rtol=1e-4), \
        "f32 kernel mismatch vs reference"

    # 2) Performance path (bf16 MXU operands, f32 accumulation): looser tolerance.
    out_bf16 = jax.block_until_ready(
        generator_forward(z, *params, use_bf16_matmul=True))
    assert out_bf16.shape == (batch, hidden_dim * (layers + 1))
    assert jnp.allclose(out_bf16, ref, atol=5e-2, rtol=5e-2), \
        "bf16-matmul kernel mismatch vs reference"

    print("KERNEL_OK")
</pallas_src>

<mosaic_0001>
module attributes {stable_mosaic.version = 11 : i64} {
  func.func @generator_kernel(%arg0: memref<8x32xf32, #tpu.memory_space<vmem>>, %arg1: memref<4x32x32xf32, #tpu.memory_space<vmem>>, %arg2: memref<4x1x32xf32, #tpu.memory_space<vmem>>, %arg3: memref<4x1x32xf32, #tpu.memory_space<vmem>>, %arg4: memref<4x1x32xf32, #tpu.memory_space<vmem>>, %arg5: memref<32x128xf32, #tpu.memory_space<vmem>>, %arg6: memref<1x128xf32, #tpu.memory_space<vmem>>, %arg7: memref<8x128xf32, #tpu.memory_space<vmem>>) attributes {dimension_semantics = [], scalar_prefetch = 0 : i64, scratch_operands = 0 : i64, tpu.core_type = #tpu.core_type<tc>} {
    %c0 = arith.constant 0 : index
    %c0_0 = arith.constant 0 : index
    %0 = vector.load %arg0[%c0, %c0_0] : memref<8x32xf32, #tpu.memory_space<vmem>>, vector<8x32xf32>
    %c0_1 = arith.constant 0 : index
    %c0_2 = arith.constant 0 : index
    %c0_3 = arith.constant 0 : index
    %1 = vector.load %arg1[%c0_1, %c0_2, %c0_3] : memref<4x32x32xf32, #tpu.memory_space<vmem>>, vector<1x32x32xf32>
    %2 = vector.shape_cast %1 : vector<1x32x32xf32> to vector<32x32xf32>
    %c0_4 = arith.constant 0 : index
    %c0_5 = arith.constant 0 : index
    %c0_6 = arith.constant 0 : index
    %3 = vector.load %arg2[%c0_4, %c0_5, %c0_6] : memref<4x1x32xf32, #tpu.memory_space<vmem>>, vector<1x1x32xf32>
    %4 = vector.shape_cast %3 : vector<1x1x32xf32> to vector<1x32xf32>
    %c0_7 = arith.constant 0 : index
    %c0_8 = arith.constant 0 : index
    %c0_9 = arith.constant 0 : index
    %5 = vector.load %arg3[%c0_7, %c0_8, %c0_9] : memref<4x1x32xf32, #tpu.memory_space<vmem>>, vector<1x1x32xf32>
    %6 = vector.shape_cast %5 : vector<1x1x32xf32> to vector<1x32xf32>
    %c0_10 = arith.constant 0 : index
    %c0_11 = arith.constant 0 : index
    %c0_12 = arith.constant 0 : index
    %7 = vector.load %arg4[%c0_10, %c0_11, %c0_12] : memref<4x1x32xf32, #tpu.memory_space<vmem>>, vector<1x1x32xf32>
    %8 = vector.shape_cast %7 : vector<1x1x32xf32> to vector<1x32xf32>
    %cst = arith.constant dense<0.000000e+00> : vector<8x32xf32>
    %9 = tpu.matmul %0, %2, %cst {dimension_numbers = #tpu.dot_dimension_numbers<[1], [0], [0], [1], [0, 0, 1, 1], [], []>} : vector<8x32xf32>, vector<32x32xf32>, vector<8x32xf32> -> vector<8x32xf32>
    %10 = vector.broadcast %4 : vector<1x32xf32> to vector<8x32xf32>
    %11 = arith.addf %9, %10 : vector<8x32xf32>
    %cst_13 = arith.constant dense<0.000000e+00> : vector<8xf32>
    %12 = vector.multi_reduction <add>, %11, %cst_13 [1] : vector<8x32xf32> to vector<8xf32>
    %13 = vector.shape_cast %12 : vector<8xf32> to vector<8x1xf32>
    %14 = arith.mulf %11, %11 : vector<8x32xf32>
    %cst_14 = arith.constant dense<0.000000e+00> : vector<8xf32>
    %15 = vector.multi_reduction <add>, %14, %cst_14 [1] : vector<8x32xf32> to vector<8xf32>
    %16 = vector.shape_cast %15 : vector<8xf32> to vector<8x1xf32>
    %cst_15 = arith.constant 3.125000e-02 : f32
    %17 = vector.broadcast %cst_15 : f32 to vector<8x1xf32>
    %18 = arith.mulf %13, %17 : vector<8x1xf32>
    %cst_16 = arith.constant 3.125000e-02 : f32
    %19 = vector.broadcast %cst_16 : f32 to vector<8x1xf32>
    %20 = arith.mulf %16, %19 : vector<8x1xf32>
    %21 = arith.mulf %18, %18 : vector<8x1xf32>
    %22 = arith.subf %20, %21 : vector<8x1xf32>
    %cst_17 = arith.constant 0.000000e+00 : f32
    %23 = vector.broadcast %cst_17 : f32 to vector<8x1xf32>
    %24 = arith.maximumf %22, %23 : vector<8x1xf32>
    %25 = vector.broadcast %18 : vector<8x1xf32> to vector<8x32xf32>
    %26 = arith.subf %11, %25 : vector<8x32xf32>
    %cst_18 = arith.constant 9.99999974E-6 : f32
    %27 = vector.broadcast %cst_18 : f32 to vector<8x1xf32>
    %28 = arith.addf %24, %27 : vector<8x1xf32>
    %29 = math.rsqrt %28 : vector<8x1xf32>
    %30 = vector.broadcast %29 : vector<8x1xf32> to vector<8x32xf32>
    %31 = arith.mulf %26, %30 : vector<8x32xf32>
    %32 = vector.broadcast %6 : vector<1x32xf32> to vector<8x32xf32>
    %33 = arith.mulf %31, %32 : vector<8x32xf32>
    %34 = vector.broadcast %8 : vector<1x32xf32> to vector<8x32xf32>
    %35 = arith.addf %33, %34 : vector<8x32xf32>
    %cst_19 = arith.constant 2.000000e-01 : f32
    %36 = vector.broadcast %cst_19 : f32 to vector<8x32xf32>
    %37 = arith.mulf %36, %35 : vector<8x32xf32>
    %38 = arith.maximumf %35, %37 : vector<8x32xf32>
    %39 = arith.addf %38, %0 : vector<8x32xf32>
    %c1 = arith.constant 1 : index
    %c0_20 = arith.constant 0 : index
    %c0_21 = arith.constant 0 : index
    %40 = vector.load %arg1[%c1, %c0_20, %c0_21] : memref<4x32x32xf32, #tpu.memory_space<vmem>>, vector<1x32x32xf32>
    %41 = vector.shape_cast %40 : vector<1x32x32xf32> to vector<32x32xf32>
    %c1_22 = arith.constant 1 : index
    %c0_23 = arith.constant 0 : index
    %c0_24 = arith.constant 0 : index
    %42 = vector.load %arg2[%c1_22, %c0_23, %c0_24] : memref<4x1x32xf32, #tpu.memory_space<vmem>>, vector<1x1x32xf32>
    %43 = vector.shape_cast %42 : vector<1x1x32xf32> to vector<1x32xf32>
    %c1_25 = arith.constant 1 : index
    %c0_26 = arith.constant 0 : index
    %c0_27 = arith.constant 0 : index
    %44 = vector.load %arg3[%c1_25, %c0_26, %c0_27] : memref<4x1x32xf32, #tpu.memory_space<vmem>>, vector<1x1x32xf32>
    %45 = vector.shape_cast %44 : vector<1x1x32xf32> to vector<1x32xf32>
    %c1_28 = arith.constant 1 : index
    %c0_29 = arith.constant 0 : index
    %c0_30 = arith.constant 0 : index
    %46 = vector.load %arg4[%c1_28, %c0_29, %c0_30] : memref<4x1x32xf32, #tpu.memory_space<vmem>>, vector<1x1x32xf32>
    %47 = vector.shape_cast %46 : vector<1x1x32xf32> to vector<1x32xf32>
    %cst_31 = arith.constant dense<0.000000e+00> : vector<8x32xf32>
    %48 = tpu.matmul %39, %41, %cst_31 {dimension_numbers = #tpu.dot_dimension_numbers<[1], [0], [0], [1], [0, 0, 1, 1], [], []>} : vector<8x32xf32>, vector<32x32xf32>, vector<8x32xf32> -> vector<8x32xf32>
    %49 = vector.broadcast %43 : vector<1x32xf32> to vector<8x32xf32>
    %50 = arith.addf %48, %49 : vector<8x32xf32>
    %cst_32 = arith.constant dense<0.000000e+00> : vector<8xf32>
    %51 = vector.multi_reduction <add>, %50, %cst_32 [1] : vector<8x32xf32> to vector<8xf32>
    %52 = vector.shape_cast %51 : vector<8xf32> to vector<8x1xf32>
    %53 = arith.mulf %50, %50 : vector<8x32xf32>
    %cst_33 = arith.constant dense<0.000000e+00> : vector<8xf32>
    %54 = vector.multi_reduction <add>, %53, %cst_33 [1] : vector<8x32xf32> to vector<8xf32>
    %55 = vector.shape_cast %54 : vector<8xf32> to vector<8x1xf32>
    %cst_34 = arith.constant 3.125000e-02 : f32
    %56 = vector.broadcast %cst_34 : f32 to vector<8x1xf32>
    %57 = arith.mulf %52, %56 : vector<8x1xf32>
    %cst_35 = arith.constant 3.125000e-02 : f32
    %58 = vector.broadcast %cst_35 : f32 to vector<8x1xf32>
    %59 = arith.mulf %55, %58 : vector<8x1xf32>
    %60 = arith.mulf %57, %57 : vector<8x1xf32>
    %61 = arith.subf %59, %60 : vector<8x1xf32>
    %cst_36 = arith.constant 0.000000e+00 : f32
    %62 = vector.broadcast %cst_36 : f32 to vector<8x1xf32>
    %63 = arith.maximumf %61, %62 : vector<8x1xf32>
    %64 = vector.broadcast %57 : vector<8x1xf32> to vector<8x32xf32>
    %65 = arith.subf %50, %64 : vector<8x32xf32>
    %cst_37 = arith.constant 9.99999974E-6 : f32
    %66 = vector.broadcast %cst_37 : f32 to vector<8x1xf32>
    %67 = arith.addf %63, %66 : vector<8x1xf32>
    %68 = math.rsqrt %67 : vector<8x1xf32>
    %69 = vector.broadcast %68 : vector<8x1xf32> to vector<8x32xf32>
    %70 = arith.mulf %65, %69 : vector<8x32xf32>
    %71 = vector.broadcast %45 : vector<1x32xf32> to vector<8x32xf32>
    %72 = arith.mulf %70, %71 : vector<8x32xf32>
    %73 = vector.broadcast %47 : vector<1x32xf32> to vector<8x32xf32>
    %74 = arith.addf %72, %73 : vector<8x32xf32>
    %cst_38 = arith.constant 2.000000e-01 : f32
    %75 = vector.broadcast %cst_38 : f32 to vector<8x32xf32>
    %76 = arith.mulf %75, %74 : vector<8x32xf32>
    %77 = arith.maximumf %74, %76 : vector<8x32xf32>
    %78 = arith.addf %77, %39 : vector<8x32xf32>
    %c2 = arith.constant 2 : index
    %c0_39 = arith.constant 0 : index
    %c0_40 = arith.constant 0 : index
    %79 = vector.load %arg1[%c2, %c0_39, %c0_40] : memref<4x32x32xf32, #tpu.memory_space<vmem>>, vector<1x32x32xf32>
    %80 = vector.shape_cast %79 : vector<1x32x32xf32> to vector<32x32xf32>
    %c2_41 = arith.constant 2 : index
    %c0_42 = arith.constant 0 : index
    %c0_43 = arith.constant 0 : index
    %81 = vector.load %arg2[%c2_41, %c0_42, %c0_43] : memref<4x1x32xf32, #tpu.memory_space<vmem>>, vector<1x1x32xf32>
    %82 = vector.shape_cast %81 : vector<1x1x32xf32> to vector<1x32xf32>
    %c2_44 = arith.constant 2 : index
    %c0_45 = arith.constant 0 : index
    %c0_46 = arith.constant 0 : index
    %83 = vector.load %arg3[%c2_44, %c0_45, %c0_46] : memref<4x1x32xf32, #tpu.memory_space<vmem>>, vector<1x1x32xf32>
    %84 = vector.shape_cast %83 : vector<1x1x32xf32> to vector<1x32xf32>
    %c2_47 = arith.constant 2 : index
    %c0_48 = arith.constant 0 : index
    %c0_49 = arith.constant 0 : index
    %85 = vector.load %arg4[%c2_47, %c0_48, %c0_49] : memref<4x1x32xf32, #tpu.memory_space<vmem>>, vector<1x1x32xf32>
    %86 = vector.shape_cast %85 : vector<1x1x32xf32> to vector<1x32xf32>
    %cst_50 = arith.constant dense<0.000000e+00> : vector<8x32xf32>
    %87 = tpu.matmul %78, %80, %cst_50 {dimension_numbers = #tpu.dot_dimension_numbers<[1], [0], [0], [1], [0, 0, 1, 1], [], []>} : vector<8x32xf32>, vector<32x32xf32>, vector<8x32xf32> -> vector<8x32xf32>
    %88 = vector.broadcast %82 : vector<1x32xf32> to vector<8x32xf32>
    %89 = arith.addf %87, %88 : vector<8x32xf32>
    %cst_51 = arith.constant dense<0.000000e+00> : vector<8xf32>
    %90 = vector.multi_reduction <add>, %89, %cst_51 [1] : vector<8x32xf32> to vector<8xf32>
    %91 = vector.shape_cast %90 : vector<8xf32> to vector<8x1xf32>
    %92 = arith.mulf %89, %89 : vector<8x32xf32>
    %cst_52 = arith.constant dense<0.000000e+00> : vector<8xf32>
    %93 = vector.multi_reduction <add>, %92, %cst_52 [1] : vector<8x32xf32> to vector<8xf32>
    %94 = vector.shape_cast %93 : vector<8xf32> to vector<8x1xf32>
    %cst_53 = arith.constant 3.125000e-02 : f32
    %95 = vector.broadcast %cst_53 : f32 to vector<8x1xf32>
    %96 = arith.mulf %91, %95 : vector<8x1xf32>
    %cst_54 = arith.constant 3.125000e-02 : f32
    %97 = vector.broadcast %cst_54 : f32 to vector<8x1xf32>
    %98 = arith.mulf %94, %97 : vector<8x1xf32>
    %99 = arith.mulf %96, %96 : vector<8x1xf32>
    %100 = arith.subf %98, %99 : vector<8x1xf32>
    %cst_55 = arith.constant 0.000000e+00 : f32
    %101 = vector.broadcast %cst_55 : f32 to vector<8x1xf32>
    %102 = arith.maximumf %100, %101 : vector<8x1xf32>
    %103 = vector.broadcast %96 : vector<8x1xf32> to vector<8x32xf32>
    %104 = arith.subf %89, %103 : vector<8x32xf32>
    %cst_56 = arith.constant 9.99999974E-6 : f32
    %105 = vector.broadcast %cst_56 : f32 to vector<8x1xf32>
    %106 = arith.addf %102, %105 : vector<8x1xf32>
    %107 = math.rsqrt %106 : vector<8x1xf32>
    %108 = vector.broadcast %107 : vector<8x1xf32> to vector<8x32xf32>
    %109 = arith.mulf %104, %108 : vector<8x32xf32>
    %110 = vector.broadcast %84 : vector<1x32xf32> to vector<8x32xf32>
    %111 = arith.mulf %109, %110 : vector<8x32xf32>
    %112 = vector.broadcast %86 : vector<1x32xf32> to vector<8x32xf32>
    %113 = arith.addf %111, %112 : vector<8x32xf32>
    %cst_57 = arith.constant 2.000000e-01 : f32
    %114 = vector.broadcast %cst_57 : f32 to vector<8x32xf32>
    %115 = arith.mulf %114, %113 : vector<8x32xf32>
    %116 = arith.maximumf %113, %115 : vector<8x32xf32>
    %117 = arith.addf %116, %78 : vector<8x32xf32>
    %c3 = arith.constant 3 : index
    %c0_58 = arith.constant 0 : index
    %c0_59 = arith.constant 0 : index
    %118 = vector.load %arg1[%c3, %c0_58, %c0_59] : memref<4x32x32xf32, #tpu.memory_space<vmem>>, vector<1x32x32xf32>
    %119 = vector.shape_cast %118 : vector<1x32x32xf32> to vector<32x32xf32>
    %c3_60 = arith.constant 3 : index
    %c0_61 = arith.constant 0 : index
    %c0_62 = arith.constant 0 : index
    %120 = vector.load %arg2[%c3_60, %c0_61, %c0_62] : memref<4x1x32xf32, #tpu.memory_space<vmem>>, vector<1x1x32xf32>
    %121 = vector.shape_cast %120 : vector<1x1x32xf32> to vector<1x32xf32>
    %c3_63 = arith.constant 3 : index
    %c0_64 = arith.constant 0 : index
    %c0_65 = arith.constant 0 : index
    %122 = vector.load %arg3[%c3_63, %c0_64, %c0_65] : memref<4x1x32xf32, #tpu.memory_space<vmem>>, vector<1x1x32xf32>
    %123 = vector.shape_cast %122 : vector<1x1x32xf32> to vector<1x32xf32>
    %c3_66 = arith.constant 3 : index
    %c0_67 = arith.constant 0 : index
    %c0_68 = arith.constant 0 : index
    %124 = vector.load %arg4[%c3_66, %c0_67, %c0_68] : memref<4x1x32xf32, #tpu.memory_space<vmem>>, vector<1x1x32xf32>
    %125 = vector.shape_cast %124 : vector<1x1x32xf32> to vector<1x32xf32>
    %cst_69 = arith.constant dense<0.000000e+00> : vector<8x32xf32>
    %126 = tpu.matmul %117, %119, %cst_69 {dimension_numbers = #tpu.dot_dimension_numbers<[1], [0], [0], [1], [0, 0, 1, 1], [], []>} : vector<8x32xf32>, vector<32x32xf32>, vector<8x32xf32> -> vector<8x32xf32>
    %127 = vector.broadcast %121 : vector<1x32xf32> to vector<8x32xf32>
    %128 = arith.addf %126, %127 : vector<8x32xf32>
    %cst_70 = arith.constant dense<0.000000e+00> : vector<8xf32>
    %129 = vector.multi_reduction <add>, %128, %cst_70 [1] : vector<8x32xf32> to vector<8xf32>
    %130 = vector.shape_cast %129 : vector<8xf32> to vector<8x1xf32>
    %131 = arith.mulf %128, %128 : vector<8x32xf32>
    %cst_71 = arith.constant dense<0.000000e+00> : vector<8xf32>
    %132 = vector.multi_reduction <add>, %131, %cst_71 [1] : vector<8x32xf32> to vector<8xf32>
    %133 = vector.shape_cast %132 : vector<8xf32> to vector<8x1xf32>
    %cst_72 = arith.constant 3.125000e-02 : f32
    %134 = vector.broadcast %cst_72 : f32 to vector<8x1xf32>
    %135 = arith.mulf %130, %134 : vector<8x1xf32>
    %cst_73 = arith.constant 3.125000e-02 : f32
    %136 = vector.broadcast %cst_73 : f32 to vector<8x1xf32>
    %137 = arith.mulf %133, %136 : vector<8x1xf32>
    %138 = arith.mulf %135, %135 : vector<8x1xf32>
    %139 = arith.subf %137, %138 : vector<8x1xf32>
    %cst_74 = arith.constant 0.000000e+00 : f32
    %140 = vector.broadcast %cst_74 : f32 to vector<8x1xf32>
    %141 = arith.maximumf %139, %140 : vector<8x1xf32>
    %142 = vector.broadcast %135 : vector<8x1xf32> to vector<8x32xf32>
    %143 = arith.subf %128, %142 : vector<8x32xf32>
    %cst_75 = arith.constant 9.99999974E-6 : f32
    %144 = vector.broadcast %cst_75 : f32 to vector<8x1xf32>
    %145 = arith.addf %141, %144 : vector<8x1xf32>
    %146 = math.rsqrt %145 : vector<8x1xf32>
    %147 = vector.broadcast %146 : vector<8x1xf32> to vector<8x32xf32>
    %148 = arith.mulf %143, %147 : vector<8x32xf32>
    %149 = vector.broadcast %123 : vector<1x32xf32> to vector<8x32xf32>
    %150 = arith.mulf %148, %149 : vector<8x32xf32>
    %151 = vector.broadcast %125 : vector<1x32xf32> to vector<8x32xf32>
    %152 = arith.addf %150, %151 : vector<8x32xf32>
    %cst_76 = arith.constant 2.000000e-01 : f32
    %153 = vector.broadcast %cst_76 : f32 to vector<8x32xf32>
    %154 = arith.mulf %153, %152 : vector<8x32xf32>
    %155 = arith.maximumf %152, %154 : vector<8x32xf32>
    %156 = arith.addf %155, %117 : vector<8x32xf32>
    %c0_77 = arith.constant 0 : index
    %c0_78 = arith.constant 0 : index
    %157 = vector.load %arg5[%c0_77, %c0_78] : memref<32x128xf32, #tpu.memory_space<vmem>>, vector<32x128xf32>
    %cst_79 = arith.constant dense<0.000000e+00> : vector<8x128xf32>
    %158 = tpu.matmul %156, %157, %cst_79 {dimension_numbers = #tpu.dot_dimension_numbers<[1], [0], [0], [1], [0, 0, 1, 1], [], []>} : vector<8x32xf32>, vector<32x128xf32>, vector<8x128xf32> -> vector<8x128xf32>
    %c0_80 = arith.constant 0 : index
    %c0_81 = arith.constant 0 : index
    %159 = vector.load %arg6[%c0_80, %c0_81] : memref<1x128xf32, #tpu.memory_space<vmem>>, vector<1x128xf32>
    %160 = vector.broadcast %159 : vector<1x128xf32> to vector<8x128xf32>
    %161 = arith.addf %158, %160 : vector<8x128xf32>
    %cst_82 = arith.constant 2.000000e-01 : f32
    %162 = vector.broadcast %cst_82 : f32 to vector<8x128xf32>
    %163 = arith.mulf %162, %161 : vector<8x128xf32>
    %164 = arith.maximumf %161, %163 : vector<8x128xf32>
    %c0_83 = arith.constant 0 : index
    %c0_84 = arith.constant 0 : index
    %165 = vector.load %arg7[%c0_83, %c0_84] : memref<8x128xf32, #tpu.memory_space<vmem>>, vector<8x128xf32>
    tpu.vector_store %arg7[%c0_83, %c0_84], %164 {strides = array<i32>} : memref<8x128xf32, #tpu.memory_space<vmem>>, vector<8x128xf32>,
    return
  }
}

</mosaic_0001>

<bundles_post_ra>
// kernel: tpu_custom_call.1
= control target key start
LH: loop header
LB: loop body
LE: loop exit
PB: predicated region body
PF: predicated region fallthrough
CT: control target
= control target key end

     0   :  { %12 = vsyncpa [#allocation3], 0  ;;  %s1070_s0 = inlined_call_operand.hbm [shape: f32[8,32], index: 0, kind: input, shape index: {}]   ;;  %s1071_s1 = inlined_call_operand.hbm [shape: f32[4,32,32], index: 1, kind: input, shape index: {}]   ;;  %s1072_s2 = inlined_call_operand.hbm [shape: f32[4,1,32], index: 2, kind: input, shape index: {}]   ;;  %s1073_s3 = inlined_call_operand.vmem [shape: f32[4,1,32], index: 3, kind: input, shape index: {}]   ;;  %s1074_s4 = inlined_call_operand.hbm [shape: f32[4,1,32], index: 4, kind: input, shape index: {}]   ;;  %s1075_s5 = inlined_call_operand.hbm [shape: f32[32,128], index: 5, kind: input, shape index: {}]   ;;  %s1076_s6 = inlined_call_operand.vmem [shape: f32[1,128], index: 6, kind: input, shape index: {}]   ;;  %s1077_s7 = inlined_call_operand.hbm [shape: f32[8,128], index: 7, kind: output, shape index: {}]  }
   0x1   :  { %13 = vsyncpa [#allocation6], 0 }
   0x2   :  { %14 = vsyncpa [#allocation9], 0 }
   0x3   :  { %15 = vsyncpa [#allocation4], 0  ;;  %s936_s24 = smov [#allocation5]  }
   0x4   :  { %s31_s25 = sshll.u32 %s936_s24, 4  ;;  %s32_s25 = int_to_ptr.vmem [resolvable:$true] %s31_s25 }
   0x5   :  { %s816_s26 = scalar_lea.vmem %s32_s25, 2048  ;;  %p821_p1 = scmp.lt.s32.totalorder %s32_s25, %s32_s25 }
   0x6   :  { %p817_p0 = scmp.ne.s32.totalorder %s32_s25, %s816_s26  ;;  %p822_p2 = scmp.lt.s32.totalorder %s816_s26, %s816_s26 }
   0x8   :  { %p823_p3 = por %p822_p2, %p821_p1 }
   0xa   :  { %p824_p4 = pnand %p823_p3, %p817_p0 }
   0xc   :  { %827 = shalt.err (!%p824_p4)
}
   0xd   :  { %s937_s27 = smov 128   ;;  %s938_s28 = smov 8  }
   0xe   :  { %37 = dma.hbm_to_vmem [thread:$0]  %s1071_s1, 2048, %s32_s25, [#allocation6], %s937_s27, %s937_s27, %s938_s28  }
   0xf   :  { %s939_s8 = smov [#allocation8]   ;;  %s940_s10 = smov [#allocation2]  }
  0x10   :  { %s57_s9 = sshll.u32 %s939_s8, 4  ;;  %s22_s11 = sshll.u32 %s940_s10, 4  ;;  %s58_s9 = int_to_ptr.vmem [resolvable:$true] %s57_s9  ;;  %s23_s11 = int_to_ptr.vmem [resolvable:$true] %s22_s11 }
  0x11   :  { %s836_s12 = scalar_lea.vmem %s58_s9, 64  ;;  %p841_p6 = scmp.lt.s32.totalorder %s58_s9, %s58_s9 }
  0x12   :  { %p837_p5 = scmp.ne.s32.totalorder %s58_s9, %s836_s12  ;;  %p842_p7 = scmp.lt.s32.totalorder %s836_s12, %s836_s12 }
  0x14   :  { %p843_p8 = por %p842_p7, %p841_p6 }
  0x16   :  { %p844_p9 = pnand %p843_p8, %p837_p5 }
  0x18   :  { %847 = shalt.err (!%p844_p9)
}
  0x19   :  { %s941_s13 = smov 16   ;;  %s942_s14 = smov 1  }
  0x1a   :  { %63 = dma.hbm_to_vmem [thread:$0]  %s1074_s4, 64, %s58_s9, [#allocation9], %s941_s13, %s941_s13, %s942_s14  }
  0x1b   :  { %s856_s1 = scalar_lea.vmem %s23_s11, 128  ;;  %p861_p11 = scmp.lt.s32.totalorder %s23_s11, %s23_s11 }
  0x1c   :  { %p857_p10 = scmp.ne.s32.totalorder %s23_s11, %s856_s1  ;;  %p862_p12 = scmp.lt.s32.totalorder %s856_s1, %s856_s1 }
  0x1e   :  { %p863_p13 = por %p862_p12, %p861_p11 }
  0x20   :  { %p864_p0 = pnand %p863_p13, %p857_p10 }
  0x22   :  { %867 = shalt.err (!%p864_p0)
}
  0x23   :  { %25 = dma.hbm_to_vmem [thread:$0]  %s1070_s0, 128, %s23_s11, [#allocation3]  }
  0x24   :  { %s943_s19 = smov [#allocation7]   ;;  %s944_s21 = smov [#allocation10]  }
  0x25   :  { %s43_s20 = sshll.u32 %s943_s19, 4  ;;  %s69_s22 = sshll.u32 %s944_s21, 4  ;;  %s44_s20 = int_to_ptr.vmem [resolvable:$true] %s43_s20  ;;  %s70_s22 = int_to_ptr.vmem [resolvable:$true] %s69_s22 }
  0x26   :  { %s876_s23 = scalar_lea.vmem %s44_s20, 64  ;;  %p881_p2 = scmp.lt.s32.totalorder %s44_s20, %s44_s20 }
  0x27   :  { %p877_p1 = scmp.ne.s32.totalorder %s44_s20, %s876_s23  ;;  %p882_p3 = scmp.lt.s32.totalorder %s876_s23, %s876_s23 }
  0x29   :  { %p883_p4 = por %p882_p3, %p881_p2 }
  0x2b   :  { %p884_p5 = pnand %p883_p4, %p877_p1 }
  0x2d   :  { %887 = shalt.err (!%p884_p5)
}
  0x2e   :  { %49 = dma.hbm_to_vmem [thread:$0]  %s1072_s2, 64, %s44_s20, [#allocation6], %s941_s13, %s941_s13, %s942_s14  }
  0x2f   :  { %s896_s25 = scalar_lea.vmem %s70_s22, 512  ;;  %p901_p7 = scmp.lt.s32.totalorder %s70_s22, %s70_s22 }
  0x30   :  { %p897_p6 = scmp.ne.s32.totalorder %s70_s22, %s896_s25  ;;  %p902_p8 = scmp.lt.s32.totalorder %s896_s25, %s896_s25 }
  0x32   :  { %p903_p9 = por %p902_p8, %p901_p7 }
  0x34   :  { %p904_p10 = pnand %p903_p9, %p897_p6 }
  0x36   :  { %907 = shalt.err (!%p904_p10)
}
  0x37   :  { %75 = dma.hbm_to_vmem [thread:$0]  %s1075_s5, 512, %s70_s22, [#allocation9], %s937_s27, %s937_s27, %s938_s28  }
  0x38   :  { %928 = dma.done.wait [#allocation3], 128  }
  0x39   :  { %929 = vsyncadd [#allocation3], 4294967168 }
  0x3a   :  { %930 = dma.done.wait [#allocation6], 2112  }
  0x3b   :  { %931 = vsyncadd [#allocation6], 4294965184 }
  0x3c   :  { %932 = dma.done.wait [#allocation9], 576  }
  0x3d   :  { %933 = vsyncadd [#allocation9], 4294966720  ;;  %v945_v0 = vmov 0.0   ;;  %vm946_vm0 = vmmov 0   ;;  %v97_v1 = vld [vmem:[#allocation5 + $0x18] sm:$0xff]  ;;  %v96_v2 = vld [vmem:[#allocation5 + $0x10] sm:$0xff] }
  0x3e   :  { %733 = vmatprep.subr.mxu0 %v945_v0  ;;  %741 = vmatprep.mubr.msk.f32.mxu0 %vm946_vm0, %v945_v0  ;;  %v95_v3 = vld [vmem:[#allocation5 + $0x8] sm:$0xff]  ;;  %v94_v4 = vld [vmem:[#allocation5] sm:$0xff]  ;;  %v93_v5 = vld [vmem:[#allocation2] sm:$0xff]  ;;  %vm107_vm1 = vcmask 261120   ;;  %s947_s12 = smov [#allocation11]  }
  0x3f   :  { %744 = vmatprep.subr.mxu1 %v945_v0  ;;  %752 = vmatprep.mubr.msk.f32.mxu1 %vm946_vm0, %v945_v0  ;;  %v687_v6 = vld [vmem:[#allocation7] ss:$0 sm:$0xff]  ;;  %v218_v13 = vld [vmem:[#allocation5 + $0x38] sm:$0xff]  ;;  %v217_v14 = vld [vmem:[#allocation5 + $0x30] sm:$0xff]  ;;  %s676_s13 = sshll.u32 %s947_s12, 4  ;;  %s677_s13 = int_to_ptr.vmem [resolvable:$true] %s676_s13 }
  0x40   :  { %734 = vmatpush3.msra.mxu0 %v97_v1  ;;  %745 = vmatpush3.msra.mxu1 %v218_v13  ;;  %v216_v15 = vld [vmem:[#allocation5 + $0x28] sm:$0xff]  ;;  %v215_v16 = vld [vmem:[#allocation5 + $0x20] sm:$0xff]  ;;  %v689_v27 = vld [vmem:[%s1073_s3] ss:$0 sm:$0xff]  ;;  %p913_p12 = scmp.lt.s32.totalorder %s677_s13, %s677_s13 }
  0x41   :  { %735 = vmatprep.subr.mxu0 %v945_v0  ;;  %746 = vmatprep.subr.mxu1 %v945_v0  ;;  %v690_v29 = vld [vmem:[#allocation8] ss:$0 sm:$0xff]  ;;  %v692_v35 = vld [vmem:[#allocation7 + $0x1] ss:$0 sm:$0xff]  ;;  %v341_v42 = vld [vmem:[#allocation5 + $0x58] sm:$0xff] }
  0x42   :  { %736 = vmatpush3.msra.mxu0 %v96_v2  ;;  %747 = vmatpush3.msra.mxu1 %v217_v14  ;;  %v340_v43 = vld [vmem:[#allocation5 + $0x50] sm:$0xff]  ;;  %v339_v44 = vld [vmem:[#allocation5 + $0x48] sm:$0xff]  ;;  %v338_v45 = vld [vmem:[#allocation5 + $0x40] sm:$0xff] }
  0x43   :  { %737 = vmatprep.subr.mxu0 %v945_v0  ;;  %748 = vmatprep.subr.mxu1 %v945_v0  ;;  %v694_v56 = vld [vmem:[%s1073_s3 + $0x1] ss:$0 sm:$0xff]  ;;  %v695_v58 = vld [vmem:[#allocation8 + $0x1] ss:$0 sm:$0xff]  ;;  %v697_v1 = vld [vmem:[#allocation7 + $0x2] ss:$0 sm:$0xff] }
  0x44   :  { %738 = vmatpush3.msra.mxu0 %v95_v3  ;;  %749 = vmatpush3.msra.mxu1 %v216_v15 }
  0x45   :  { %739 = vmatprep.subr.mxu0 %v945_v0  ;;  %750 = vmatprep.subr.mxu1 %v945_v0 }
  0x46   :  { %740 = vmatpush3.msra.mxu0 %v94_v4  ;;  %751 = vmatpush3.msra.mxu1 %v215_v16 }
  0x47   :  { %742 = vmatmul.mubr.msk.f32.vlgmr.msra.gmra.mxu0 %vm107_vm1, %v93_v5  ;;  %755 = vmatprep.subr.mxu0 %v945_v0 }
  0x48   :  { %763 = vmatprep.mubr.msk.f32.mxu0 %vm946_vm0, %v945_v0  ;;  %766 = vmatprep.subr.mxu1 %v945_v0 }
  0x49   :  { %756 = vmatpush3.msra.mxu0 %v341_v42 }
  0x4a   :  { %757 = vmatprep.subr.mxu0 %v945_v0 }
  0x4b   :  { %758 = vmatpush3.msra.mxu0 %v340_v43 }
  0x4c   :  { %759 = vmatprep.subr.mxu0 %v945_v0 }
  0x4d   :  { %760 = vmatpush3.msra.mxu0 %v339_v44 }
  0x4e   :  { %761 = vmatprep.subr.mxu0 %v945_v0 }
  0x4f   :  { %762 = vmatpush3.msra.mxu0 %v338_v45 }
  0x50   :  { %777 = vmatprep.subr.mxu0 %v945_v0 }
 0x107   :  { %v177_v7 = vpop.f32.mrf.mxu0 }
 0x108   :  { %v178_v8 = vadd.f32 %v687_v6, %v177_v7 }
 0x109   :  { %v743_v9 = vpop.f32.mrf.mxu0 }
 0x10a   :  { %v181_v10 = vsel %vm107_vm1, %v178_v8, 0.0  ;;  %v184_v11 = vmul.f32 %v178_v8, %v178_v8  ;;  %v463_v9 = vld [vmem:[#allocation5 + $0x70] sm:$0xff] }
 0x10b   :  { %182 = vadd.xlane.f32.xlu0 %v181_v10  ;;  %v462_v10 = vld [vmem:[#allocation5 + $0x68] sm:$0xff] }
 0x10c   :  { %v185_v12 = vsel %vm107_vm1, %v184_v11, 0.0  ;;  %v461_v11 = vld [vmem:[#allocation5 + $0x60] sm:$0xff] }
 0x10f   :  { %186 = vadd.xlane.f32.xlu0 %v185_v12 }
 0x194   :  { %v183_v17 = vpop.xlane.xlu0 %182 }
 0x195   :  { %v188_v18 = vmul.f32 0.03125, %v183_v17 }
 0x197   :  { %v190_v20 = vmul.f32 %v188_v18, %v188_v18  ;;  %v193_v25 = vsub.f32 %v178_v8, %v188_v18  ;;  %v464_v8 = vld [vmem:[#allocation5 + $0x78] sm:$0xff] }
 0x198   :  { %v187_v19 = vpop.xlane.xlu0 %186 }
 0x199   :  { %v189_v21 = vmul.f32 0.03125, %v187_v19 }
 0x19b   :  { %v191_v22 = vsub.f32 %v189_v21, %v190_v20 }
 0x19d   :  { %v192_v23 = vmax.f32 %v191_v22, 0.0  ;;  %v699_v22 = vld [vmem:[%s1073_s3 + $0x2] ss:$0 sm:$0xff] }
 0x19f   :  { %v194_v24 = vadd.f32 1e-05, %v192_v23 }
 0x1a1   :  { %800 = vrsqrt.f32 %v194_v24  ;;  %v700_v24 = vld [vmem:[#allocation8 + $0x2] ss:$0 sm:$0xff] }
 0x1ae   :  { %v801_v26 = vpop.eup %800 }
 0x1af   :  { %v196_v28 = vmul.f32 %v801_v26, %v193_v25 }
 0x1b1   :  { %v203_v30 = vmul.f32 %v689_v27, %v196_v28 }
 0x1b3   :  { %v210_v31 = vadd.f32 %v690_v29, %v203_v30  ;;  %v702_v30 = vld [vmem:[#allocation7 + $0x3] ss:$0 sm:$0xff] }
 0x1b5   :  { %v211_v32 = vmul.f32 0.2, %v210_v31 }
 0x1b7   :  { %v212_v33 = vmax.f32 %v210_v31, %v211_v32 }
 0x1b9   :  { %v213_v34 = vadd.f32 %v212_v33, %v93_v5 }
 0x1bb   :  { %753 = vmatmul.mubr.msk.f32.vlgmr.msra.gmra.mxu1 %vm107_vm1, %v213_v34 }
 0x1bc   :  { %774 = vmatprep.mubr.msk.f32.mxu1 %vm946_vm0, %v945_v0  ;;  %767 = vmatpush3.msra.mxu1 %v464_v8 }
 0x1bd   :  { %768 = vmatprep.subr.mxu1 %v945_v0 }
 0x1be   :  { %769 = vmatpush3.msra.mxu1 %v463_v9 }
 0x1bf   :  { %770 = vmatprep.subr.mxu1 %v945_v0 }
 0x1c0   :  { %771 = vmatpush3.msra.mxu1 %v462_v10 }
 0x1c1   :  { %772 = vmatprep.subr.mxu1 %v945_v0 }
 0x1c2   :  { %773 = vmatpush3.msra.mxu1 %v461_v11 }
 0x27b   :  { %v300_v36 = vpop.f32.mrf.mxu1 }
 0x27c   :  { %v301_v37 = vadd.f32 %v692_v35, %v300_v36 }
 0x27d   :  { %v754_v38 = vpop.f32.mrf.mxu1 }
 0x27e   :  { %v304_v39 = vsel %vm107_vm1, %v301_v37, 0.0  ;;  %v307_v40 = vmul.f32 %v301_v37, %v301_v37  ;;  %v585_v38 = vld [vmem:[#allocation10 + $0x10] sm:$0xff] }
 0x27f   :  { %305 = vadd.xlane.f32.xlu1 %v304_v39  ;;  %v584_v39 = vld [vmem:[#allocation10 + $0x8] sm:$0xff] }
 0x280   :  { %v308_v41 = vsel %vm107_vm1, %v307_v40, 0.0  ;;  %v583_v40 = vld [vmem:[#allocation10] sm:$0xff] }
 0x283   :  { %309 = vadd.xlane.f32.xlu1 %v308_v41 }
 0x308   :  { %v306_v46 = vpop.xlane.xlu1 %305 }
 0x309   :  { %v311_v47 = vmul.f32 0.03125, %v306_v46 }
 0x30b   :  { %v313_v49 = vmul.f32 %v311_v47, %v311_v47  ;;  %v316_v54 = vsub.f32 %v301_v37, %v311_v47  ;;  %v586_v37 = vld [vmem:[#allocation10 + $0x18] sm:$0xff] }
 0x30c   :  { %v310_v48 = vpop.xlane.xlu1 %309 }
 0x30d   :  { %v312_v50 = vmul.f32 0.03125, %v310_v48 }
 0x30f   :  { %v314_v51 = vsub.f32 %v312_v50, %v313_v49 }
 0x311   :  { %v315_v52 = vmax.f32 %v314_v51, 0.0  ;;  %v704_v51 = vld [vmem:[%s1073_s3 + $0x3] ss:$0 sm:$0xff]  ;;  %s908_s3 = scalar_lea.vmem %s677_s13, 128 }
 0x312   :  { %p909_p11 = scmp.ne.s32.totalorder %s677_s13, %s908_s3  ;;  %p914_p13 = scmp.lt.s32.totalorder %s908_s3, %s908_s3 }
 0x313   :  { %v317_v53 = vadd.f32 1e-05, %v315_v52 }
 0x314   :  { %p915_p0 = por %p914_p13, %p913_p12 }
 0x315   :  { %802 = vrsqrt.f32 %v317_v53  ;;  %v705_v53 = vld [vmem:[#allocation8 + $0x3] ss:$0 sm:$0xff] }
 0x316   :  { %p916_p1 = pnand %p915_p0, %p909_p11 }
 0x322   :  { %v803_v55 = vpop.eup %802 }
 0x323   :  { %v319_v57 = vmul.f32 %v803_v55, %v316_v54 }
 0x325   :  { %v326_v59 = vmul.f32 %v694_v56, %v319_v57 }
 0x327   :  { %v333_v60 = vadd.f32 %v695_v58, %v326_v59  ;;  %v706_v58 = vld [vmem:[%s1076_s6] ss:$0 sm:$0xff] }
 0x329   :  { %v334_v61 = vmul.f32 0.2, %v333_v60 }
 0x32b   :  { %v335_v62 = vmax.f32 %v333_v60, %v334_v61 }
 0x32d   :  { %v336_v63 = vadd.f32 %v335_v62, %v213_v34 }
 0x32f   :  { %764 = vmatmul.mubr.msk.f32.vlgmr.msra.gmra.mxu0 %vm107_vm1, %v336_v63 }
 0x330   :  { %785 = vmatprep.mubr.msk.f32.mxu0 %vm946_vm0, %v945_v0  ;;  %778 = vmatpush3.msra.mxu0 %v586_v37 }
 0x331   :  { %779 = vmatprep.subr.mxu0 %v945_v0 }
 0x332   :  { %780 = vmatpush3.msra.mxu0 %v585_v38 }
 0x333   :  { %781 = vmatprep.subr.mxu0 %v945_v0 }
 0x334   :  { %782 = vmatpush3.msra.mxu0 %v584_v39 }
 0x335   :  { %783 = vmatprep.subr.mxu0 %v945_v0 }
 0x336   :  { %784 = vmatpush3.msra.mxu0 %v583_v40 }
 0x3ef   :  { %v423_v2 = vpop.f32.mrf.mxu0 }
 0x3f0   :  { %v424_v3 = vadd.f32 %v697_v1, %v423_v2 }
 0x3f1   :  { %v765_v4 = vpop.f32.mrf.mxu0 }
 0x3f2   :  { %v427_v5 = vsel %vm107_vm1, %v424_v3, 0.0  ;;  %v430_v6 = vmul.f32 %v424_v3, %v424_v3 }
 0x3f3   :  { %428 = vadd.xlane.f32.xlu0 %v427_v5 }
 0x3f4   :  { %v431_v7 = vsel %vm107_vm1, %v430_v6, 0.0 }
 0x3f5   :  { %432 = vadd.xlane.f32.xlu1 %v431_v7 }
 0x47c   :  { %v429_v12 = vpop.xlane.xlu0 %428 }
 0x47d   :  { %v434_v13 = vmul.f32 0.03125, %v429_v12 }
 0x47e   :  { %v433_v14 = vpop.xlane.xlu1 %432 }
 0x47f   :  { %v436_v15 = vmul.f32 %v434_v13, %v434_v13  ;;  %v435_v16 = vmul.f32 0.03125, %v433_v14  ;;  %v439_v20 = vsub.f32 %v424_v3, %v434_v13 }
 0x481   :  { %v437_v17 = vsub.f32 %v435_v16, %v436_v15 }
 0x483   :  { %v438_v18 = vmax.f32 %v437_v17, 0.0 }
 0x485   :  { %v440_v19 = vadd.f32 1e-05, %v438_v18 }
 0x487   :  { %804 = vrsqrt.f32 %v440_v19 }
 0x494   :  { %v805_v21 = vpop.eup %804 }
 0x495   :  { %v442_v23 = vmul.f32 %v805_v21, %v439_v20 }
 0x497   :  { %v449_v25 = vmul.f32 %v699_v22, %v442_v23 }
 0x499   :  { %v456_v26 = vadd.f32 %v700_v24, %v449_v25 }
 0x49b   :  { %v457_v27 = vmul.f32 0.2, %v456_v26 }
 0x49d   :  { %v458_v28 = vmax.f32 %v456_v26, %v457_v27 }
 0x49f   :  { %v459_v29 = vadd.f32 %v458_v28, %v336_v63 }
 0x4a1   :  { %775 = vmatmul.mubr.msk.f32.vlgmr.msra.gmra.mxu1 %vm107_vm1, %v459_v29 }
 0x561   :  { %v546_v31 = vpop.f32.mrf.mxu1 }
 0x562   :  { %v547_v32 = vadd.f32 %v702_v30, %v546_v31 }
 0x563   :  { %v776_v33 = vpop.f32.mrf.mxu1 }
 0x564   :  { %v550_v34 = vsel %vm107_vm1, %v547_v32, 0.0  ;;  %v553_v35 = vmul.f32 %v547_v32, %v547_v32 }
 0x565   :  { %551 = vadd.xlane.f32.xlu0 %v550_v34 }
 0x566   :  { %v554_v36 = vsel %vm107_vm1, %v553_v35, 0.0 }
 0x567   :  { %555 = vadd.xlane.f32.xlu1 %v554_v36 }
 0x5ee   :  { %v552_v41 = vpop.xlane.xlu0 %551 }
 0x5ef   :  { %v557_v42 = vmul.f32 0.03125, %v552_v41 }
 0x5f0   :  { %v556_v43 = vpop.xlane.xlu1 %555 }
 0x5f1   :  { %v559_v44 = vmul.f32 %v557_v42, %v557_v42  ;;  %v558_v45 = vmul.f32 0.03125, %v556_v43  ;;  %v562_v49 = vsub.f32 %v547_v32, %v557_v42 }
 0x5f3   :  { %v560_v46 = vsub.f32 %v558_v45, %v559_v44 }
 0x5f5   :  { %v561_v47 = vmax.f32 %v560_v46, 0.0 }
 0x5f7   :  { %v563_v48 = vadd.f32 1e-05, %v561_v47 }
 0x5f9   :  { %806 = vrsqrt.f32 %v563_v48 }
 0x606   :  { %v807_v50 = vpop.eup %806 }
 0x607   :  { %v565_v52 = vmul.f32 %v807_v50, %v562_v49 }
 0x609   :  { %v572_v54 = vmul.f32 %v704_v51, %v565_v52 }
 0x60b   :  { %v579_v0 = vadd.f32 %v705_v53, %v572_v54 }
 0x60d   :  { %v580_v55 = vmul.f32 0.2, %v579_v0 }
 0x60f   :  { %v581_v56 = vmax.f32 %v579_v0, %v580_v55 }
 0x611   :  { %v582_v57 = vadd.f32 %v581_v56, %v459_v29 }
 0x613   :  { %786 = vmatmul.mubr.msk.f32.vlgmr.msra.gmra.mxu0 %vm107_vm1, %v582_v57 }
 0x6d3   :  { %v663_v59 = vpop.f32.mrf.mxu0 }
 0x6d4   :  { %v664_v60 = vadd.f32 %v706_v58, %v663_v59 }
 0x6d5   :  { %v787_v61 = vpop.f32.mrf.mxu0 }
 0x6d6   :  { %v667_v62 = vmul.f32 0.2, %v664_v60 }
 0x6d8   :  { %v668_v63 = vmax.f32 %v664_v60, %v667_v62 }
 0x6da   :  { %669 = vst [vmem:[#allocation11] sm:$0xff] %v668_v63 }
 0x6db   :  { %919 = shalt.err (!%p916_p1)
}
 0x6dc   :  { %679 = dma.vmem_to_hbm [thread:$0]  %s677_s13, 128, %s1077_s7, [#allocation4]  }
 0x6dd   :  { %934 = dma.done.wait [#allocation4], 128  }
 0x6de   :  { %935 = vsyncadd [#allocation4], 4294967168 }
 0x6df   :  { %683 = vsyncpa [#allocation3], 1 }
 0x6e0   :  { %684 = vsyncpa [#allocation6], 1 }
 0x6e1   :  { %685 = vsyncpa [#allocation9], 1 }
 0x6e2   :  { %686 = vsyncpa [#allocation4], 1 }

</bundles_post_ra>
